<compile_context>
chip_gen: v5e
topology: v5e:2x2
jax: 0.10.0
libtpu: 0.0.40
codegen_flags: <defaults>
</compile_context>

<pallas_src>
import functools

import numpy as np
import jax
import jax.numpy as jnp
from jax import lax
from jax.experimental import pallas as pl
from jax.experimental.pallas import tpu as pltpu

_LANE = 128
_NEG = -1e30          # plain Python float: NOT captured as a jax constant


def _round_up(x, m):
    return ((x + m - 1) // m) * m


def info_nce_kernel(n, tm, rows_aligned, cols_aligned,
                    scale_ref, im_ref, s_ref,          # inputs
                    loss_ref, logits_ref,              # outputs
                    m_c, l_c, acc_r):                  # scratch
    """One row tile of the symmetric InfoNCE loss.

    n                 : static true batch size
    tm                : rows per grid step (multiple of 8)
    rows/cols_aligned : static flags -> skip masking when no padding exists
    """
    step = pl.program_id(0)
    last = pl.num_programs(0) - 1

    @pl.when(step == 0)
    def _init():
        m_c[...] = jnp.full_like(m_c, _NEG)
        l_c[...] = jnp.zeros_like(l_c)
        acc_r[...] = jnp.zeros_like(acc_r)

    # MXU matmul with the contraction expressed directly on the embedding dim
    # (no transpose / relayout of s).  exp(logit_scale) is applied to the f32
    # result: the O(tm*Nc) VPU multiply is free filler and bf16-exact.
    scale = scale_ref[0, 0]
    logits = lax.dot_general(
        im_ref[...], s_ref[...],
        dimension_numbers=(((1,), (1,)), ((), ())),
        preferred_element_type=jnp.float32) * scale           # (tm, Nc) f32
    logits_ref[...] = logits.astype(logits_ref.dtype)         # lane-dense store

    nc = logits.shape[1]
    col_idx = lax.broadcasted_iota(jnp.int32, (1, nc), 1)     # (1, Nc)
    row_idx = step * tm + lax.broadcasted_iota(jnp.int32, (tm, 1), 0)  # (tm, 1)

    # --- row-wise logsumexp (logits_per_image direction) -------------------
    lg_r = logits if cols_aligned else jnp.where(col_idx < n, logits, _NEG)
    m_r = jnp.max(lg_r, axis=-1, keepdims=True)
    lse_r = jnp.log(jnp.sum(jnp.exp(lg_r - m_r), axis=-1, keepdims=True)) + m_r

    # Correct-class logit, read from the same MXU-produced tile (shared by the
    # row and column cross-entropies).
    diag = jnp.sum(jnp.where(col_idx == row_idx, logits, 0.0),
                   axis=-1, keepdims=True)

    contrib = lse_r - 2.0 * diag                               # (tm, 1)
    if not rows_aligned:
        contrib = jnp.where(row_idx < n, contrib, 0.0)
    acc_r[...] += jnp.sum(contrib)

    # --- online column-wise logsumexp (logits_per_text direction) ----------
    lg_c = logits if rows_aligned else jnp.where(row_idx < n, logits, _NEG)
    m_t = jnp.max(lg_c, axis=0, keepdims=True)                 # (1, Nc)
    m_new = jnp.maximum(m_c[...], m_t)
    l_c[...] = (l_c[...] * jnp.exp(m_c[...] - m_new)
                + jnp.sum(jnp.exp(lg_c - m_new), axis=0, keepdims=True))
    m_c[...] = m_new

    @pl.when(step == last)
    def _finalize():
        lse_c = jnp.log(l_c[...]) + m_c[...]                   # (1, Nc)
        if cols_aligned:
            sum_lse_c = jnp.sum(lse_c)
        else:
            sum_lse_c = jnp.sum(jnp.where(col_idx < n, lse_c, 0.0))
        # loss = 0.5/N * (sum(lse_row) + sum(lse_col) - 2*sum(diag))
        loss_ref[...] = (acc_r[...] + sum_lse_c) * (0.5 / n)


def info_nce_loss(motion_emb, text_emb, logit_scale_param, *, row_block=None):
    """Returns (loss scalar f32, logits_per_image (N, N) f32)."""
    n, d = motion_emb.shape
    assert text_emb.shape == (n, d)
    assert n >= 1

    n8 = _round_up(n, 8)
    if row_block is None:
        # Single step for small batches; 256-row tiles beyond that so VMEM
        # stays O(tm*N + N*D) instead of O(N^2).
        tm = n8 if n8 <= 512 else 256
    else:
        tm = _round_up(min(row_block, n8), 8)
    nr_pad = _round_up(n, tm)          # logits rows: row-tile multiple (>=8)
    nc_pad = _round_up(n, _LANE)       # logits cols: lane-dense 128 multiple

    rows_aligned = nr_pad == n
    cols_aligned = nc_pad == n

    # Conditional, asymmetric padding (D is never padded; no-ops when aligned).
    im_p = motion_emb if rows_aligned else jnp.pad(
        motion_emb, ((0, nr_pad - n), (0, 0)))
    s_p = text_emb if cols_aligned else jnp.pad(
        text_emb, ((0, nc_pad - n), (0, 0)))
    # exp(logit_scale) once in f32 outside the kernel.
    scale = jnp.exp(jnp.asarray(logit_scale_param, jnp.float32)).reshape(1, 1)

    grid = (nr_pad // tm,)
    itemsize = jnp.dtype(motion_emb.dtype).itemsize

    # VMEM budget: im/logits tiles double-buffered, s resident, LSE scratch.
    vmem_est = (2 * tm * d * itemsize + 2 * nc_pad * d * itemsize
                + 2 * tm * nc_pad * 4 + 2 * 8 * nc_pad * 4 + (1 << 20))
    vmem_limit = int(min(vmem_est, 100 << 20)) if vmem_est > (32 << 20) else None

    cost = pl.CostEstimate(
        flops=2 * nr_pad * nc_pad * d + 8 * nr_pad * nc_pad,
        transcendentals=2 * nr_pad * nc_pad,
        bytes_accessed=(nr_pad + nc_pad) * d * itemsize + nr_pad * nc_pad * 4)

    kernel = functools.partial(
        info_nce_kernel, n, tm, rows_aligned, cols_aligned)

    # TODO(synk): on v7x split the row range across the two TensorCores (per-
    # core column-LSE partials merged at the end) and column-tile the inner
    # softmax so EUP exp work overlaps the MXU matmul of the next tile.
    loss, logits_p = pl.pallas_call(
        kernel,
        out_shape=(
            jax.ShapeDtypeStruct((1, 1), jnp.float32),
            jax.ShapeDtypeStruct((nr_pad, nc_pad), jnp.float32),
        ),
        grid=grid,
        in_specs=[
            pl.BlockSpec(memory_space=pltpu.SMEM),              # exp(scale)
            pl.BlockSpec((tm, d), lambda i: (i, 0)),            # im row tile
            pl.BlockSpec((nc_pad, d), lambda i: (0, 0)),        # s (resident)
        ],
        out_specs=(
            pl.BlockSpec((1, 1), lambda i: (0, 0)),             # scalar loss
            pl.BlockSpec((tm, nc_pad), lambda i: (i, 0)),       # logits tile
        ),
        scratch_shapes=[
            pltpu.VMEM((1, nc_pad), jnp.float32),               # m_c (col max)
            pltpu.VMEM((1, nc_pad), jnp.float32),               # l_c (col sumexp)
            pltpu.VMEM((1, 1), jnp.float32),                    # row accumulator
        ],
        compiler_params=pltpu.CompilerParams(
            dimension_semantics=("arbitrary",),
            vmem_limit_bytes=vmem_limit),
        cost_estimate=cost,
    )(scale, im_p, s_p)

    loss = loss[0, 0]
    if rows_aligned and cols_aligned:
        return loss, logits_p
    return loss, logits_p[:n, :n]


def _reference(motion_emb, text_emb, logit_scale_param):
    scale = jnp.exp(jnp.asarray(logit_scale_param, jnp.float32))
    logits = scale * (motion_emb.astype(jnp.float32)
                      @ text_emb.astype(jnp.float32).T)
    n = logits.shape[0]

    def ce(lg):
        lse = jax.nn.logsumexp(lg, axis=-1)
        return jnp.mean(lse - lg[jnp.arange(n), jnp.arange(n)])

    return 0.5 * (ce(logits) + ce(logits.T)), logits


if __name__ == "__main__":
    # Deterministic parameter init (nn.Parameter(ones([]) * log(1/0.07))).
    logit_scale = jnp.float32(np.log(1.0 / 0.07))
    key = jax.random.PRNGKey(0)
    k1, k2, k3, k4 = jax.random.split(key, 4)

    # Case 1: N multiple of 8 -> row-aligned fast path, padded columns only.
    N1, D = 8, 32
    im1 = jax.random.normal(k1, (N1, D), dtype=jnp.float32)
    tx1 = jax.random.normal(k2, (N1, D), dtype=jnp.float32)
    loss1, logits1 = jax.block_until_ready(info_nce_loss(im1, tx1, logit_scale))
    ref_l1, ref_lg1 = _reference(im1, tx1, logit_scale)
    assert np.allclose(np.asarray(loss1), np.asarray(ref_l1),
                       rtol=1e-4, atol=1e-4), (loss1, ref_l1)
    assert np.allclose(np.asarray(logits1), np.asarray(ref_lg1),
                       rtol=1e-4, atol=1e-3), "logits mismatch (case 1)"

    # Case 2: unaligned batch + forced multi-step row grid (exercises row/col
    # masking and the online column-logsumexp accumulators).
    N2 = 20
    im2 = jax.random.normal(k3, (N2, D), dtype=jnp.float32)
    tx2 = jax.random.normal(k4, (N2, D), dtype=jnp.float32)
    loss2, logits2 = jax.block_until_ready(
        info_nce_loss(im2, tx2, logit_scale, row_block=8))
    ref_l2, ref_lg2 = _reference(im2, tx2, logit_scale)
    assert np.allclose(np.asarray(loss2), np.asarray(ref_l2),
                       rtol=1e-4, atol=1e-4), (loss2, ref_l2)
    assert np.allclose(np.asarray(logits2), np.asarray(ref_lg2),
                       rtol=1e-4, atol=1e-3), "logits mismatch (case 2)"

    print("KERNEL_OK")
</pallas_src>

<mosaic_0001>
module attributes {stable_mosaic.version = 11 : i64} {
  func.func @info_nce_kernel(%arg0: i32, %arg1: memref<1x1xf32, #tpu.memory_space<smem>>, %arg2: memref<8x32xf32, #tpu.memory_space<vmem>>, %arg3: memref<128x32xf32, #tpu.memory_space<vmem>>, %arg4: memref<1x1xf32, #tpu.memory_space<vmem>>, %arg5: memref<8x128xf32, #tpu.memory_space<vmem>>, %arg6: memref<1x128xf32, #tpu.memory_space<vmem>>, %arg7: memref<1x128xf32, #tpu.memory_space<vmem>>, %arg8: memref<1x1xf32, #tpu.memory_space<vmem>>) attributes {dimension_semantics = [#tpu.dimension_semantics<arbitrary>], iteration_bounds = array<i64: 1>, scalar_prefetch = 0 : i64, scratch_operands = 3 : i64, tpu.core_type = #tpu.core_type<tc>, window_params = [{transform_indices = @transform_0, window_bounds = array<i64: 1, 1>}, {transform_indices = @transform_1, window_bounds = array<i64: 8, 32>}, {pipeline_mode = #tpu.pipeline_mode<synchronous>, transform_indices = @transform_2, window_bounds = array<i64: 128, 32>}, {pipeline_mode = #tpu.pipeline_mode<synchronous>, transform_indices = @transform_3, window_bounds = array<i64: 1, 1>}, {transform_indices = @transform_4, window_bounds = array<i64: 8, 128>}]} {
    %c0_i32 = arith.constant 0 : i32
    %0 = arith.cmpi eq, %arg0, %c0_i32 : i32
    %1 = arith.extui %0 : i1 to i32
    %c0_i32_0 = arith.constant 0 : i32
    %2 = arith.cmpi ne, %1, %c0_i32_0 : i32
    scf.if %2 {
      %cst_34 = arith.constant -1.000000e+30 : f32
      %68 = vector.broadcast %cst_34 : f32 to vector<1x128xf32>
      %c0_35 = arith.constant 0 : index
      %c0_36 = arith.constant 0 : index
      %69 = vector.load %arg6[%c0_35, %c0_36] : memref<1x128xf32, #tpu.memory_space<vmem>>, vector<1x128xf32>
      tpu.vector_store %arg6[%c0_35, %c0_36], %68 {strides = array<i32>} : memref<1x128xf32, #tpu.memory_space<vmem>>, vector<1x128xf32>,
      %cst_37 = arith.constant 0.000000e+00 : f32
      %70 = vector.broadcast %cst_37 : f32 to vector<1x128xf32>
      %c0_38 = arith.constant 0 : index
      %c0_39 = arith.constant 0 : index
      %71 = vector.load %arg7[%c0_38, %c0_39] : memref<1x128xf32, #tpu.memory_space<vmem>>, vector<1x128xf32>
      tpu.vector_store %arg7[%c0_38, %c0_39], %70 {strides = array<i32>} : memref<1x128xf32, #tpu.memory_space<vmem>>, vector<1x128xf32>,
      %cst_40 = arith.constant 0.000000e+00 : f32
      %72 = vector.broadcast %cst_40 : f32 to vector<1x1xf32>
      %c0_41 = arith.constant 0 : index
      %c0_42 = arith.constant 0 : index
      %73 = vector.load %arg8[%c0_41, %c0_42] : memref<1x1xf32, #tpu.memory_space<vmem>>, vector<1x1xf32>
      tpu.vector_store %arg8[%c0_41, %c0_42], %72 {strides = array<i32>} : memref<1x1xf32, #tpu.memory_space<vmem>>, vector<1x1xf32>,
    } else {
    }
    %c0 = arith.constant 0 : index
    %c0_1 = arith.constant 0 : index
    %3 = memref.load %arg1[%c0, %c0_1] : memref<1x1xf32, #tpu.memory_space<smem>>
    %c0_2 = arith.constant 0 : index
    %c0_3 = arith.constant 0 : index
    %4 = vector.load %arg2[%c0_2, %c0_3] : memref<8x32xf32, #tpu.memory_space<vmem>>, vector<8x32xf32>
    %c0_4 = arith.constant 0 : index
    %c0_5 = arith.constant 0 : index
    %5 = vector.load %arg3[%c0_4, %c0_5] : memref<128x32xf32, #tpu.memory_space<vmem>>, vector<128x32xf32>
    %cst = arith.constant dense<0.000000e+00> : vector<8x128xf32>
    %6 = tpu.matmul %4, %5, %cst {dimension_numbers = #tpu.dot_dimension_numbers<[1], [1], [0], [0], [0, 0, 1, 0], [], []>} : vector<8x32xf32>, vector<128x32xf32>, vector<8x128xf32> -> vector<8x128xf32>
    %7 = vector.broadcast %3 : f32 to vector<8x128xf32>
    %8 = arith.mulf %6, %7 : vector<8x128xf32>
    %c0_6 = arith.constant 0 : index
    %c0_7 = arith.constant 0 : index
    %9 = vector.load %arg5[%c0_6, %c0_7] : memref<8x128xf32, #tpu.memory_space<vmem>>, vector<8x128xf32>
    tpu.vector_store %arg5[%c0_6, %c0_7], %8 {strides = array<i32>} : memref<8x128xf32, #tpu.memory_space<vmem>>, vector<8x128xf32>,
    %10 = tpu.iota {dimensions = array<i32: 1>} : vector<1x128xi32>
    %c8_i32 = arith.constant 8 : i32
    %11 = arith.muli %arg0, %c8_i32 : i32
    %12 = tpu.iota {dimensions = array<i32: 0>} : vector<8x1xi32>
    %13 = vector.broadcast %11 : i32 to vector<8x1xi32>
    %14 = arith.addi %13, %12 : vector<8x1xi32>
    %c8_i32_8 = arith.constant 8 : i32
    %15 = vector.broadcast %c8_i32_8 : i32 to vector<1x128xi32>
    %16 = arith.cmpi slt, %10, %15 : vector<1x128xi32>
    %cst_9 = arith.constant -1.000000e+30 : f32
    %17 = vector.shape_cast %16 : vector<1x128xi1> to vector<1x128xi1>
    %18 = vector.broadcast %17 : vector<1x128xi1> to vector<8x128xi1>
    %19 = vector.broadcast %cst_9 : f32 to vector<8x128xf32>
    %20 = arith.select %18, %8, %19 : vector<8x128xi1>, vector<8x128xf32>
    %cst_10 = arith.constant dense<0xFF800000> : vector<8xf32>
    %21 = vector.multi_reduction <maximumf>, %20, %cst_10 [1] : vector<8x128xf32> to vector<8xf32>
    %22 = vector.shape_cast %21 : vector<8xf32> to vector<8x1xf32>
    %23 = vector.broadcast %22 : vector<8x1xf32> to vector<8x128xf32>
    %24 = arith.subf %20, %23 : vector<8x128xf32>
    %25 = math.exp %24 : vector<8x128xf32>
    %cst_11 = arith.constant dense<0.000000e+00> : vector<8xf32>
    %26 = vector.multi_reduction <add>, %25, %cst_11 [1] : vector<8x128xf32> to vector<8xf32>
    %27 = vector.shape_cast %26 : vector<8xf32> to vector<8x1xf32>
    %28 = math.log %27 : vector<8x1xf32>
    %29 = arith.addf %28, %22 : vector<8x1xf32>
    %30 = vector.broadcast %10 : vector<1x128xi32> to vector<8x128xi32>
    %31 = vector.broadcast %14 : vector<8x1xi32> to vector<8x128xi32>
    %32 = arith.cmpi eq, %30, %31 : vector<8x128xi32>
    %cst_12 = arith.constant 0.000000e+00 : f32
    %33 = vector.broadcast %cst_12 : f32 to vector<8x128xf32>
    %34 = arith.select %32, %8, %33 : vector<8x128xi1>, vector<8x128xf32>
    %cst_13 = arith.constant dense<0.000000e+00> : vector<8xf32>
    %35 = vector.multi_reduction <add>, %34, %cst_13 [1] : vector<8x128xf32> to vector<8xf32>
    %36 = vector.shape_cast %35 : vector<8xf32> to vector<8x1xf32>
    %cst_14 = arith.constant 2.000000e+00 : f32
    %37 = vector.broadcast %cst_14 : f32 to vector<8x1xf32>
    %38 = arith.mulf %37, %36 : vector<8x1xf32>
    %39 = arith.subf %29, %38 : vector<8x1xf32>
    %c0_15 = arith.constant 0 : index
    %c0_16 = arith.constant 0 : index
    %40 = vector.load %arg8[%c0_15, %c0_16] : memref<1x1xf32, #tpu.memory_space<vmem>>, vector<1x1xf32>
    %41 = vector.shape_cast %39 : vector<8x1xf32> to vector<1x8x1xf32>
    %cst_17 = arith.constant dense<0.000000e+00> : vector<1xf32>
    %42 = vector.multi_reduction <add>, %41, %cst_17 [1, 2] : vector<1x8x1xf32> to vector<1xf32>
    %43 = vector.shape_cast %42 : vector<1xf32> to vector<1x1x1xf32>
    %44 = vector.extract %43[0, 0, 0] : f32 from vector<1x1x1xf32>
    %45 = vector.broadcast %44 : f32 to vector<1x1xf32>
    %46 = arith.addf %40, %45 : vector<1x1xf32>
    %c0_18 = arith.constant 0 : index
    %c0_19 = arith.constant 0 : index
    %47 = vector.load %arg8[%c0_18, %c0_19] : memref<1x1xf32, #tpu.memory_space<vmem>>, vector<1x1xf32>
    tpu.vector_store %arg8[%c0_18, %c0_19], %46 {strides = array<i32>} : memref<1x1xf32, #tpu.memory_space<vmem>>, vector<1x1xf32>,
    %cst_20 = arith.constant dense<0xFF800000> : vector<128xf32>
    %48 = vector.multi_reduction <maximumf>, %8, %cst_20 [0] : vector<8x128xf32> to vector<128xf32>
    %49 = vector.shape_cast %48 : vector<128xf32> to vector<1x128xf32>
    %c0_21 = arith.constant 0 : index
    %c0_22 = arith.constant 0 : index
    %50 = vector.load %arg6[%c0_21, %c0_22] : memref<1x128xf32, #tpu.memory_space<vmem>>, vector<1x128xf32>
    %51 = arith.maximumf %50, %49 : vector<1x128xf32>
    %c0_23 = arith.constant 0 : index
    %c0_24 = arith.constant 0 : index
    %52 = vector.load %arg7[%c0_23, %c0_24] : memref<1x128xf32, #tpu.memory_space<vmem>>, vector<1x128xf32>
    %c0_25 = arith.constant 0 : index
    %c0_26 = arith.constant 0 : index
    %53 = vector.load %arg6[%c0_25, %c0_26] : memref<1x128xf32, #tpu.memory_space<vmem>>, vector<1x128xf32>
    %54 = arith.subf %53, %51 : vector<1x128xf32>
    %55 = math.exp %54 : vector<1x128xf32>
    %56 = arith.mulf %52, %55 : vector<1x128xf32>
    %57 = vector.broadcast %51 : vector<1x128xf32> to vector<8x128xf32>
    %58 = arith.subf %8, %57 : vector<8x128xf32>
    %59 = math.exp %58 : vector<8x128xf32>
    %cst_27 = arith.constant dense<0.000000e+00> : vector<128xf32>
    %60 = vector.multi_reduction <add>, %59, %cst_27 [0] : vector<8x128xf32> to vector<128xf32>
    %61 = vector.shape_cast %60 : vector<128xf32> to vector<1x128xf32>
    %62 = arith.addf %56, %61 : vector<1x128xf32>
    %c0_28 = arith.constant 0 : index
    %c0_29 = arith.constant 0 : index
    %63 = vector.load %arg7[%c0_28, %c0_29] : memref<1x128xf32, #tpu.memory_space<vmem>>, vector<1x128xf32>
    tpu.vector_store %arg7[%c0_28, %c0_29], %62 {strides = array<i32>} : memref<1x128xf32, #tpu.memory_space<vmem>>, vector<1x128xf32>,
    %c0_30 = arith.constant 0 : index
    %c0_31 = arith.constant 0 : index
    %64 = vector.load %arg6[%c0_30, %c0_31] : memref<1x128xf32, #tpu.memory_space<vmem>>, vector<1x128xf32>
    tpu.vector_store %arg6[%c0_30, %c0_31], %51 {strides = array<i32>} : memref<1x128xf32, #tpu.memory_space<vmem>>, vector<1x128xf32>,
    %c0_i32_32 = arith.constant 0 : i32
    %65 = arith.cmpi eq, %arg0, %c0_i32_32 : i32
    %66 = arith.extui %65 : i1 to i32
    %c0_i32_33 = arith.constant 0 : i32
    %67 = arith.cmpi ne, %66, %c0_i32_33 : i32
    scf.if %67 {
      %c0_34 = arith.constant 0 : index
      %c0_35 = arith.constant 0 : index
      %68 = vector.load %arg7[%c0_34, %c0_35] : memref<1x128xf32, #tpu.memory_space<vmem>>, vector<1x128xf32>
      %69 = math.log %68 : vector<1x128xf32>
      %c0_36 = arith.constant 0 : index
      %c0_37 = arith.constant 0 : index
      %70 = vector.load %arg6[%c0_36, %c0_37] : memref<1x128xf32, #tpu.memory_space<vmem>>, vector<1x128xf32>
      %71 = arith.addf %69, %70 : vector<1x128xf32>
      %c8_i32_38 = arith.constant 8 : i32
      %72 = vector.broadcast %c8_i32_38 : i32 to vector<1x128xi32>
      %73 = arith.cmpi slt, %10, %72 : vector<1x128xi32>
      %cst_39 = arith.constant 0.000000e+00 : f32
      %74 = vector.broadcast %cst_39 : f32 to vector<1x128xf32>
      %75 = arith.select %73, %71, %74 : vector<1x128xi1>, vector<1x128xf32>
      %76 = vector.shape_cast %75 : vector<1x128xf32> to vector<1x1x128xf32>
      %cst_40 = arith.constant dense<0.000000e+00> : vector<1xf32>
      %77 = vector.multi_reduction <add>, %76, %cst_40 [1, 2] : vector<1x1x128xf32> to vector<1xf32>
      %78 = vector.shape_cast %77 : vector<1xf32> to vector<1x1x1xf32>
      %79 = vector.extract %78[0, 0, 0] : f32 from vector<1x1x1xf32>
      %c0_41 = arith.constant 0 : index
      %c0_42 = arith.constant 0 : index
      %80 = vector.load %arg8[%c0_41, %c0_42] : memref<1x1xf32, #tpu.memory_space<vmem>>, vector<1x1xf32>
      %81 = vector.broadcast %79 : f32 to vector<1x1xf32>
      %82 = arith.addf %80, %81 : vector<1x1xf32>
      %cst_43 = arith.constant 6.250000e-02 : f32
      %83 = vector.broadcast %cst_43 : f32 to vector<1x1xf32>
      %84 = arith.mulf %82, %83 : vector<1x1xf32>
      %c0_44 = arith.constant 0 : index
      %c0_45 = arith.constant 0 : index
      %85 = vector.load %arg4[%c0_44, %c0_45] : memref<1x1xf32, #tpu.memory_space<vmem>>, vector<1x1xf32>
      tpu.vector_store %arg4[%c0_44, %c0_45], %84 {strides = array<i32>} : memref<1x1xf32, #tpu.memory_space<vmem>>, vector<1x1xf32>,
    } else {
    }
    return
  }
  func.func @transform_0(%arg0: i32) -> (i32, i32) {
    %c0_i32 = arith.constant 0 : i32
    %c0_i32_0 = arith.constant 0 : i32
    %c0_i32_1 = arith.constant 0 : i32
    return %c0_i32, %c0_i32_0 : i32, i32
  }
  func.func @transform_1(%arg0: i32) -> (i32, i32) {
    %c0_i32 = arith.constant 0 : i32
    %c0_i32_0 = arith.constant 0 : i32
    return %arg0, %c0_i32 : i32, i32
  }
  func.func @transform_2(%arg0: i32) -> (i32, i32) {
    %c0_i32 = arith.constant 0 : i32
    %c0_i32_0 = arith.constant 0 : i32
    %c0_i32_1 = arith.constant 0 : i32
    return %c0_i32, %c0_i32_0 : i32, i32
  }
  func.func @transform_3(%arg0: i32) -> (i32, i32) {
    %c0_i32 = arith.constant 0 : i32
    %c0_i32_0 = arith.constant 0 : i32
    %c0_i32_1 = arith.constant 0 : i32
    return %c0_i32, %c0_i32_0 : i32, i32
  }
  func.func @transform_4(%arg0: i32) -> (i32, i32) {
    %c0_i32 = arith.constant 0 : i32
    %c0_i32_0 = arith.constant 0 : i32
    return %arg0, %c0_i32 : i32, i32
  }
}

</mosaic_0001>

<bundles_post_ra>
// kernel: tpu_custom_call.1
= control target key start
LH: loop header
LB: loop body
LE: loop exit
PB: predicated region body
PF: predicated region fallthrough
CT: control target
= control target key end

     0   :  { %11 = vsyncpa [#allocation7], 0  ;;  %vm45_vm0 = vcmask 261120   ;;  %s448_s0 = inlined_call_operand.<no memory space> [shape: f32[1,1], index: 0, kind: input, shape index: {}]   ;;  %s449_s1 = inlined_call_operand.vmem [shape: f32[8,32], index: 1, kind: input, shape index: {}]   ;;  %s450_s2 = inlined_call_operand.vmem [shape: f32[128,32], index: 2, kind: input, shape index: {}]   ;;  %s451_s3 = inlined_call_operand.hbm [shape: f32[1,1], index: 3, kind: output, shape index: {0}]   ;;  %s452_s4 = inlined_call_operand.hbm [shape: f32[8,128], index: 4, kind: output, shape index: {1}]  }
   0x1   :  { %v44_v0 = vld [vmem:[%s450_s2 + $0x78] sm:$0xff]  ;;  %v43_v1 = vld [vmem:[%s450_s2 + $0x70] sm:$0xff] }
   0x2   :  { %248 = vmatpush.xpose.msk.msra.mxu0 %vm45_vm0, %v44_v0 }
   0x3   :  { %12 = vsyncpa [#allocation9], 0  ;;  %v42_v2 = vld [vmem:[%s450_s2 + $0x68] sm:$0xff]  ;;  %v41_v3 = vld [vmem:[%s450_s2 + $0x60] sm:$0xff]  ;;  %v335_v9 = vmov -1e+30   ;;  %v120_v19 = vlaneseq  ;;  %v117_v22 = vstv %s448_s0 }
   0x4   :  { %v40_v4 = vld [vmem:[%s450_s2 + $0x58] sm:$0xff]  ;;  %v39_v5 = vld [vmem:[%s450_s2 + $0x50] sm:$0xff]  ;;  %v38_v6 = vld [vmem:[%s450_s2 + $0x48] sm:$0xff]  ;;  %23 = vst [vmem:[#allocation2] sm:$0x1] %v335_v9  ;;  %v336_v11 = vmov 0.0  }
   0x5   :  { %v37_v7 = vld [vmem:[%s450_s2 + $0x40] sm:$0xff]  ;;  %v36_v8 = vld [vmem:[%s450_s2 + $0x38] sm:$0xff]  ;;  %v35_v10 = vld [vmem:[%s450_s2 + $0x30] sm:$0xff]  ;;  %24 = vst [vmem:[#allocation3] sm:$0x1] %v336_v11  ;;  %v121_v20 = vand.u32 127, %v120_v19 }
   0x6   :  { %249 = vmatpush.xpose.msk.msra.mxu0 %vm45_vm0, %v43_v1  ;;  %v34_v12 = vld [vmem:[%s450_s2 + $0x28] sm:$0xff]  ;;  %v33_v13 = vld [vmem:[%s450_s2 + $0x20] sm:$0xff]  ;;  %v32_v14 = vld [vmem:[%s450_s2 + $0x18] sm:$0xff]  ;;  %v124_v21 = vshrl.u32 %v120_v19, 7  ;;  %vm200_vm3 = vcmask 1040384   ;;  %vm148_vm4 = vcmask 7168  }
   0x7   :  { %v31_v15 = vld [vmem:[%s450_s2 + $0x10] sm:$0xff]  ;;  %v30_v16 = vld [vmem:[%s450_s2 + $0x8] sm:$0xff]  ;;  %v29_v17 = vld [vmem:[%s450_s2] sm:$0xff]  ;;  %vm127_vm2 = vcmp.lt.s32.totalorder %v121_v20, 8  ;;  %s337_s0 = smov [#allocation8]   ;;  %s234_s26 = sshll.u32 %s452_s4, 4  ;;  %s235_s26 = int_to_ptr.hbm [resolvable:$true] %s234_s26 }
   0x8   :  { %v28_v18 = vld [vmem:[%s449_s1] sm:$0xff]  ;;  %vm141_vm1 = vcmp.eq.s32.totalorder %v121_v20, %v124_v21  ;;  %s232_s1 = sshll.u32 %s337_s0, 4  ;;  %vm25_vm5 = vcmask 0   ;;  %s338_s28 = smov [#allocation6]   ;;  %s233_s1 = int_to_ptr.vmem [resolvable:$true] %s232_s1 }
   0x9   :  { %26 = vst.msk [vmem:[#allocation4] sm:$0x1] %vm25_vm5, %v336_v11  ;;  %s221_s29 = sshll.u32 %s338_s28, 4  ;;  %s223_s6 = sshll.u32 %s451_s3, 4  ;;  %s222_s29 = int_to_ptr.vmem [resolvable:$true] %s221_s29  ;;  %s224_s6 = int_to_ptr.hbm [resolvable:$true] %s223_s6 }
   0xa   :  { %250 = vmatpush.xpose.msk.msra.mxu0 %vm45_vm0, %v42_v2 }
   0xb   :  { %v169_v32 = vld [vmem:[#allocation2] sm:$0x1] }
   0xc   :  { %v171_v46 = vld [vmem:[#allocation3] sm:$0x1] }
   0xe   :  { %251 = vmatpush.xpose.msk.msra.mxu0 %vm45_vm0, %v41_v3 }
  0x10   :  { %v147_v21 = vld [vmem:[#allocation4] sm:$0x1] }
  0x12   :  { %252 = vmatpush.xpose.msk.msra.mxu0 %vm45_vm0, %v40_v4 }
  0x16   :  { %253 = vmatpush.xpose.msk.msra.mxu0 %vm45_vm0, %v39_v5 }
  0x1a   :  { %254 = vmatpush.xpose.msk.msra.mxu0 %vm45_vm0, %v38_v6 }
  0x1e   :  { %255 = vmatpush.xpose.msk.msra.mxu0 %vm45_vm0, %v37_v7 }
  0x22   :  { %256 = vmatpush.xpose.msk.msra.mxu0 %vm45_vm0, %v36_v8 }
  0x26   :  { %257 = vmatpush.xpose.msk.msra.mxu0 %vm45_vm0, %v35_v10 }
  0x2a   :  { %258 = vmatpush.xpose.msk.msra.mxu0 %vm45_vm0, %v34_v12 }
  0x2e   :  { %259 = vmatpush.xpose.msk.msra.mxu0 %vm45_vm0, %v33_v13 }
  0x32   :  { %260 = vmatpush.xpose.msk.msra.mxu0 %vm45_vm0, %v32_v14 }
  0x36   :  { %261 = vmatpush.xpose.msk.msra.mxu0 %vm45_vm0, %v31_v15 }
  0x3a   :  { %262 = vmatpush.xpose.msk.msra.mxu0 %vm45_vm0, %v30_v16 }
  0x3e   :  { %263 = vmatpush.xpose.msk.msra.mxu0 %vm45_vm0, %v29_v17 }
  0x41   :  { %264 = vmatmul.msk.f32.vlgmr.msra.gmra.mxu0 %vm45_vm0, %v28_v18 }
  0xbe   :  { %v114_v23 = vpop.f32.mrf.mxu0 }
  0xbf   :  { %v118_v24 = vmul.f32 %v117_v22, %v114_v23 }
  0xc1   :  { %v163_v25 = vrot.slane %v118_v24, 4  ;;  %119 = vst [vmem:[#allocation8] sm:$0xff] %v118_v24  ;;  %v142_v26 = vsel %vm141_vm1, %v118_v24, 0.0  ;;  %v130_v27 = vsel %vm127_vm2, %v118_v24, -1e+30 }
  0xc2   :  { %143 = vadd.xlane.f32.xlu1 %v142_v26  ;;  %131 = vmax.xlane.f32.xlu0 %v130_v27  ;;  %237 = dma.vmem_to_hbm [thread:$0]  %s233_s1, 128, %s235_s26, [#allocation9]  }
  0xc3   :  { %v164_v28 = vmax.f32 %v118_v24, %v163_v25 }
  0xc5   :  { %v165_v29 = vrot.slane %v164_v28, 2 }
  0xc7   :  { %v166_v30 = vmax.f32 %v164_v28, %v165_v29 }
  0xc9   :  { %v167_v31 = vrot.slane %v166_v30, 1 }
  0xcb   :  { %v168_v33 = vmax.f32 %v166_v30, %v167_v31 }
  0xcd   :  { %v170_v34 = vmax.f32 %v169_v32, %v168_v33 }
  0xcf   :  { %v177_v35 = vperm.slane %v170_v34, 0  ;;  %190 = vst [vmem:[#allocation2] sm:$0x1] %v170_v34  ;;  %v172_v38 = vsub.f32 %v169_v32, %v170_v34 }
  0xd1   :  { %v179_v36 = vsub.f32 %v118_v24, %v177_v35  ;;  %v173_v39 = vmul.f32 1.442695, %v172_v38 }
  0xd3   :  { %v180_v37 = vmul.f32 1.442695, %v179_v36 }
  0xd5   :  { %273 = vpow2.f32 %v180_v37 }
  0xd6   :  { %275 = vpow2.f32 %v173_v39  ;;  %v197_v54 = vld [vmem:[#allocation2] sm:$0x1] }
  0xdb   :  { %v274_v40 = vpop.eup %273 }
  0xdc   :  { %v182_v41 = vrot.slane %v274_v40, 4  ;;  %v276_v45 = vpop.eup %275 }
  0xdd   :  { %v175_v48 = vmul.f32 %v276_v45, %v171_v46 }
  0xde   :  { %v183_v42 = vadd.f32 %v274_v40, %v182_v41 }
  0xe0   :  { %v184_v43 = vrot.slane %v183_v42, 2 }
  0xe2   :  { %v185_v44 = vadd.f32 %v184_v43, %v183_v42 }
  0xe4   :  { %v186_v47 = vrot.slane %v185_v44, 1 }
  0xe6   :  { %v187_v49 = vadd.f32 %v186_v47, %v185_v44 }
  0xe8   :  { %v188_v50 = vadd.f32 %v187_v49, %v175_v48 }
  0xea   :  { %189 = vst [vmem:[#allocation3] sm:$0x1] %v188_v50 }
  0xf1   :  { %v194_v51 = vld [vmem:[#allocation3] sm:$0x1] }
  0xf2   :  { %277 = vlog2.f32 %v194_v51 }
  0xf8   :  { %v278_v52 = vpop.eup %277 }
  0xf9   :  { %v196_v53 = vmul.f32 0.6931472, %v278_v52 }
  0xfb   :  { %v198_v55 = vadd.f32 %v197_v54, %v196_v53 }
  0xfd   :  { %v199_v56 = vsel %vm127_vm2, %v198_v55, 0.0 }
  0xfe   :  { %v201_v57 = vsel %vm200_vm3, %v199_v56, 0.0 }
  0xff   :  { %202 = vadd.xlane.f32.xlu2 %v201_v57 }
 0x135   :  { %v132_v58 = vpop.xlane.xlu0 %131  ;;  %v144_v0 = vpop.xlane.xlu1 %143 }
 0x136   :  { %v133_v59 = vsub.f32 %v130_v27, %v132_v58  ;;  %v145_v2 = vmul.f32 2.0, %v144_v0 }
 0x138   :  { %v134_v60 = vmul.f32 1.442695, %v133_v59 }
 0x13a   :  { %279 = vpow2.f32 %v134_v60 }
 0x140   :  { %v280_v61 = vpop.eup %279 }
 0x141   :  { %136 = vadd.xlane.f32.xlu0 %v280_v61 }
 0x172   :  { %v203_v6 = vpop.xlane.xlu2 %202 }
 0x173   :  { %v204_v7 = vrot.slane %v203_v6, 4 }
 0x175   :  { %v205_v8 = vadd.f32 %v204_v7, %v203_v6 }
 0x177   :  { %v206_v9 = vrot.slane %v205_v8, 2 }
 0x179   :  { %v207_v14 = vadd.f32 %v206_v9, %v205_v8 }
 0x17b   :  { %v208_v17 = vrot.slane %v207_v14, 1 }
 0x17d   :  { %v209_v20 = vadd.f32 %v208_v17, %v207_v14 }
 0x1b4   :  { %v137_v62 = vpop.xlane.xlu0 %136 }
 0x1b5   :  { %281 = vlog2.f32 %v137_v62 }
 0x1bb   :  { %v282_v63 = vpop.eup %281 }
 0x1bc   :  { %v139_v1 = vmul.f32 0.6931472, %v282_v63 }
 0x1be   :  { %v140_v3 = vadd.f32 %v139_v1, %v132_v58 }
 0x1c0   :  { %v146_v4 = vsub.f32 %v140_v3, %v145_v2 }
 0x1c2   :  { %v149_v5 = vsel %vm148_vm4, %v146_v4, 0.0 }
 0x1c3   :  { %150 = vadd.xlane.f32.xlu1 %v149_v5 }
 0x236   :  { %v151_v10 = vpop.xlane.xlu1 %150 }
 0x237   :  { %v152_v12 = vrot.slane %v151_v10, 4 }
 0x239   :  { %v153_v13 = vadd.f32 %v152_v12, %v151_v10 }
 0x23b   :  { %v154_v15 = vrot.slane %v153_v13, 2 }
 0x23d   :  { %v155_v16 = vadd.f32 %v154_v15, %v153_v13 }
 0x23f   :  { %v156_v18 = vrot.slane %v155_v16, 1 }
 0x241   :  { %v157_v19 = vadd.f32 %v156_v18, %v155_v16 }
 0x243   :  { %265 = vpush %v157_v19 }
 0x244   :  { %267 = vpush %v209_v20 }
 0x274   :  { %s266_s4 = spop %265 }
 0x275   :  { %v159_v22 = vstv %s266_s4  ;;  %s268_s27 = spop %267 }
 0x276   :  { %v160_v11 = vadd.f32 %v159_v22, %v147_v21  ;;  %v212_v24 = vstv %s268_s27 }
 0x278   :  { %162 = vst.msk [vmem:[#allocation4] sm:$0x1] %vm25_vm5, %v160_v11 }
 0x27f   :  { %v211_v23 = vld [vmem:[#allocation4] sm:$0x1] }
 0x280   :  { %v213_v25 = vadd.f32 %v212_v24, %v211_v23 }
 0x282   :  { %v214_v26 = vmul.f32 0.0625, %v213_v25 }
 0x284   :  { %215 = vst.msk [vmem:[#allocation6] sm:$0x1] %vm25_vm5, %v214_v26 }
 0x285   :  { %226 = dma.vmem_to_hbm [thread:$0]  %s222_s29, 16, %s224_s6, [#allocation7]  }
 0x286   :  { %331 = dma.done.wait [#allocation7], 16  }
 0x287   :  { %332 = vsyncadd [#allocation7], 4294967280 }
 0x288   :  { %333 = dma.done.wait [#allocation9], 128  }
 0x289   :  { %334 = vsyncadd [#allocation9], 4294967168 }
 0x28a   :  { %246 = vsyncpa [#allocation7], 1 }
 0x28b   :  { %247 = vsyncpa [#allocation9], 1 }

</bundles_post_ra>
